<compile_context>
chip_gen: v5e
topology: v5e:2x2
jax: 0.10.0
libtpu: 0.0.40
codegen_flags: <defaults>
</compile_context>

<pallas_src>
import jax
import jax.numpy as jnp
from jax.experimental import pallas as pl
from jax.experimental.pallas import tpu as pltpu


def _round_up(x, m):
    return (x + m - 1) // m * m


# ---------------------------------------------------------------------------
# Kernel 1: small-vocab path — one-hot (bf16) @ table (bf16) on the MXU.
# ---------------------------------------------------------------------------
def _onehot_matmul_kernel(idx_ref, table_ref, out_ref):
    # idx_ref:   (TN, 1)     int32     tile of flattened indices
    # table_ref: (V, E_pad)  bfloat16  full table, VMEM-resident (single buffer)
    # out_ref:   (TN, E_pad) float32
    idx = idx_ref[...]                                    # (TN, 1)
    tn = out_ref.shape[0]
    v = table_ref.shape[0]
    iota_v = jax.lax.broadcasted_iota(jnp.int32, (tn, v), 1)
    onehot = (idx == iota_v).astype(jnp.bfloat16)         # exact 0.0 / 1.0
    out_ref[...] = jnp.dot(
        onehot, table_ref[...], preferred_element_type=jnp.float32
    ).astype(out_ref.dtype)


# ---------------------------------------------------------------------------
# Kernel 2: large-vocab path — row gather from VMEM table, indices in SMEM.
# ---------------------------------------------------------------------------
def _gather_kernel(idx_smem, table_ref, out_ref):
    # idx_smem:  (N_pad,)    int32    all flattened indices (scalar-prefetched, SMEM)
    # table_ref: (V, E_pad)  float32  full table, VMEM-resident (single buffer)
    # out_ref:   (TN, E_pad) float32
    tn = out_ref.shape[0]
    v = table_ref.shape[0]
    base = pl.program_id(0) * tn

    def body(r, carry):
        row = idx_smem[base + r]
        # Clamp: VMEM has no runtime OOB check; out-of-range indices must not
        # read arbitrary memory.  (PyTorch would raise instead.)
        row = jnp.minimum(jnp.maximum(row, 0), v - 1)
        out_ref[pl.ds(r, 1), :] = table_ref[pl.ds(row, 1), :]
        return carry

    jax.lax.fori_loop(0, tn, body, 0)


# ---------------------------------------------------------------------------
# Wrapper
# ---------------------------------------------------------------------------
def absolute_time_embedding(x, table, *, tile_n=256, matmul_max_vocab=128,
                            vmem_limit_bytes=48 * 1024 * 1024):
    """Forward of AbsoluteTimeEmbedding: table[x], x:(B,S) int -> (B,S,E) float32."""
    B, S = x.shape
    V, E = table.shape
    N = B * S

    # Lane-dense output: pad the embedding dim up to a multiple of 128.
    E_pad = _round_up(E, 128)
    # Large row tiles (feedback: >=128/256), clamped for tiny inputs, multiple of 8.
    tn = max(8, min(_round_up(tile_n, 8), _round_up(N, 8)))
    N_pad = _round_up(N, tn)
    n_tiles = N_pad // tn

    idx_flat = jnp.pad(x.reshape(-1).astype(jnp.int32), (0, N_pad - N))
    table_p = jnp.pad(table.astype(jnp.float32), ((0, 0), (0, E_pad - E)))

    compiler_params = pltpu.CompilerParams(
        dimension_semantics=("parallel",),          # shard the row grid across TCs
        vmem_limit_bytes=vmem_limit_bytes,          # explicit scoped-VMEM budget
    )

    if V <= matmul_max_vocab:
        # Tiny vocab: bf16 one-hot matmul (exact zeros for padding rows).
        out_flat = pl.pallas_call(
            _onehot_matmul_kernel,
            out_shape=jax.ShapeDtypeStruct((N_pad, E_pad), jnp.float32),
            grid_spec=pltpu.PrefetchScalarGridSpec(
                num_scalar_prefetch=0,
                grid=(n_tiles,),
                in_specs=[
                    pl.BlockSpec((tn, 1), lambda i: (i, 0)),             # index tile
                    pl.BlockSpec(memory_space=pltpu.MemorySpace.VMEM),   # resident table
                ],
                out_specs=pl.BlockSpec((tn, E_pad), lambda i: (i, 0)),
            ),
            compiler_params=compiler_params,
        )(idx_flat.reshape(N_pad, 1), table_p.astype(jnp.bfloat16))
    else:
        # Realistic vocab: true gather; indices live in SMEM via scalar prefetch.
        out_flat = pl.pallas_call(
            _gather_kernel,
            out_shape=jax.ShapeDtypeStruct((N_pad, E_pad), jnp.float32),
            grid_spec=pltpu.PrefetchScalarGridSpec(
                num_scalar_prefetch=1,
                grid=(n_tiles,),
                in_specs=[
                    pl.BlockSpec(memory_space=pltpu.MemorySpace.VMEM),   # resident table
                ],
                out_specs=pl.BlockSpec((tn, E_pad), lambda i, idx: (i, 0)),
            ),
            compiler_params=compiler_params,
        )(idx_flat, table_p)

    return out_flat[:N, :E].reshape(B, S, E)


def make_embedding_table(key, vocab_size, embed_size):
    # Mirrors nn.Embedding(..., padding_idx=0) init: N(0,1) weights, row 0 zeroed.
    table = jax.random.normal(key, (vocab_size, embed_size), dtype=jnp.float32)
    table = table.at[0].set(0.0)
    return table


if __name__ == "__main__":
    key = jax.random.PRNGKey(0)
    k_tab1, k_idx1, k_tab2, k_idx2 = jax.random.split(key, 4)

    # --- Test 1: small shapes from the module spec (tiny vocab -> matmul path) ---
    vocab_size, embed_size = 16, 32
    B, S = 2, 8
    table = make_embedding_table(k_tab1, vocab_size, embed_size)
    x = jax.random.randint(k_idx1, (B, S), 0, vocab_size, dtype=jnp.int32)

    out = jax.block_until_ready(absolute_time_embedding(x, table))
    ref = table[x]
    assert out.shape == (B, S, embed_size)
    # matmul path uses a bf16 table copy -> compare at bf16 tolerance
    assert jnp.allclose(out, ref, rtol=1e-2, atol=1e-2), "matmul-path mismatch"
    # padding rows (index 0) must be exactly zero
    assert bool(jnp.all(jnp.where((x == 0)[..., None], out == 0.0, True)))

    # --- Test 2: larger vocab / non-128 embed dim (exercises the gather path) ---
    vocab_size2, embed_size2 = 512, 160
    B2, S2 = 4, 256
    table2 = make_embedding_table(k_tab2, vocab_size2, embed_size2)
    x2 = jax.random.randint(k_idx2, (B2, S2), 0, vocab_size2, dtype=jnp.int32)

    out2 = jax.block_until_ready(absolute_time_embedding(x2, table2))
    ref2 = table2[x2]
    assert out2.shape == (B2, S2, embed_size2)
    assert jnp.allclose(out2, ref2, atol=1e-6), "gather-path mismatch"
    assert bool(jnp.all(jnp.where((x2 == 0)[..., None], out2 == 0.0, True)))

    print("KERNEL_OK")
</pallas_src>

<mosaic_0001>
module attributes {stable_mosaic.version = 11 : i64} {
  func.func @_onehot_matmul_kernel(%arg0: i32, %arg1: memref<16x1xi32, #tpu.memory_space<vmem>>, %arg2: memref<16x128xbf16, #tpu.memory_space<vmem>>, %arg3: memref<16x128xf32, #tpu.memory_space<vmem>>) attributes {dimension_semantics = [#tpu.dimension_semantics<parallel>], iteration_bounds = array<i64: 1>, scalar_prefetch = 0 : i64, scratch_operands = 0 : i64, tpu.core_type = #tpu.core_type<tc>, window_params = [{transform_indices = @transform_0, window_bounds = array<i64: 16, 1>}, {pipeline_mode = #tpu.pipeline_mode<synchronous>, transform_indices = @transform_1, window_bounds = array<i64: 16, 128>}, {transform_indices = @transform_2, window_bounds = array<i64: 16, 128>}]} {
    %c0 = arith.constant 0 : index
    %c0_0 = arith.constant 0 : index
    %0 = vector.load %arg1[%c0, %c0_0] : memref<16x1xi32, #tpu.memory_space<vmem>>, vector<16x1xi32>
    %1 = tpu.iota {dimensions = array<i32: 1>} : vector<16x16xi32>
    %2 = vector.broadcast %0 : vector<16x1xi32> to vector<16x16xi32>
    %3 = arith.cmpi eq, %2, %1 : vector<16x16xi32>
    %4 = arith.extui %3 : vector<16x16xi1> to vector<16x16xi32>
    %5 = arith.sitofp %4 : vector<16x16xi32> to vector<16x16xf32>
    %6 = arith.truncf %5 : vector<16x16xf32> to vector<16x16xbf16>
    %c0_1 = arith.constant 0 : index
    %c0_2 = arith.constant 0 : index
    %7 = vector.load %arg2[%c0_1, %c0_2] : memref<16x128xbf16, #tpu.memory_space<vmem>>, vector<16x128xbf16>
    %cst = arith.constant dense<0.000000e+00> : vector<16x128xf32>
    %8 = tpu.matmul %6, %7, %cst {dimension_numbers = #tpu.dot_dimension_numbers<[1], [0], [0], [1], [0, 0, 1, 1], [], []>} : vector<16x16xbf16>, vector<16x128xbf16>, vector<16x128xf32> -> vector<16x128xf32>
    %c0_3 = arith.constant 0 : index
    %c0_4 = arith.constant 0 : index
    %9 = vector.load %arg3[%c0_3, %c0_4] : memref<16x128xf32, #tpu.memory_space<vmem>>, vector<16x128xf32>
    tpu.vector_store %arg3[%c0_3, %c0_4], %8 {strides = array<i32>} : memref<16x128xf32, #tpu.memory_space<vmem>>, vector<16x128xf32>,
    return
  }
  func.func @transform_0(%arg0: i32) -> (i32, i32) {
    %c0_i32 = arith.constant 0 : i32
    %c0_i32_0 = arith.constant 0 : i32
    return %arg0, %c0_i32 : i32, i32
  }
  func.func @transform_1(%arg0: i32) -> (i32, i32) {
    %c0_i32 = arith.constant 0 : i32
    %c0_i32_0 = arith.constant 0 : i32
    %c0_i32_1 = arith.constant 0 : i32
    return %c0_i32, %c0_i32_0 : i32, i32
  }
  func.func @transform_2(%arg0: i32) -> (i32, i32) {
    %c0_i32 = arith.constant 0 : i32
    %c0_i32_0 = arith.constant 0 : i32
    return %arg0, %c0_i32 : i32, i32
  }
}

</mosaic_0001>

<bundles_post_ra>
// kernel: tpu_custom_call.1
= control target key start
LH: loop header
LB: loop body
LE: loop exit
PB: predicated region body
PF: predicated region fallthrough
CT: control target
= control target key end

     0   :  { %s148_s0 = inlined_call_operand.vmem [shape: s32[16,1], index: 0, kind: input, shape index: {}]   ;;  %s149_s1 = inlined_call_operand.vmem [shape: bf16[16,128], index: 1, kind: input, shape index: {}]   ;;  %s150_s2 = inlined_call_operand.hbm [shape: f32[16,128], index: 2, kind: output, shape index: {}]  }
   0x1   :  { %v13_v0 = vld [vmem:[%s148_s0] sm:$0xff] }
   0x2   :  { %7 = vsyncpa [#allocation3], 0  ;;  %v116_v1 = vmov 0   ;;  %v14_v2 = vld [vmem:[%s148_s0 + $0x8] sm:$0xff]  ;;  %v83_v3 = vld [vmem:[%s149_s1] sm:$0xff]  ;;  %v15_v4 = vlaneseq  ;;  %v117_v8 = vmov 0.0  }
   0x3   :  { %89 = vset.pattern.permute.xlu0 %v116_v1  ;;  %49 = vmatpush.bf16.msra.mxu0 %v83_v3  ;;  %vm38_vm2 = vcmask 130048   ;;  %s118_s0 = smov [#allocation2]   ;;  %s64_s1 = sshll.u32 %s150_s2, 4  ;;  %s65_s1 = int_to_ptr.hbm [resolvable:$true] %s64_s1 }
   0x4   :  { %18 = vperm.xlu0 %89, %v13_v0   ;;  %v16_v6 = vand.u32 127, %v15_v4  ;;  %s62_s15 = sshll.u32 %s118_s0, 4  ;;  %s119_s18 = smov 128   ;;  %s63_s15 = int_to_ptr.vmem [resolvable:$true] %s62_s15 }
   0x5   :  { %s120_s19 = smov 8  }
   0xc   :  { %21 = vperm.xlu0 %89, %v14_v2  }
  0x76   :  { %v19_v5 = vpop.permute.xlu0 %18 }
  0x77   :  { %vm23_vm0 = vcmp.eq.s32.totalorder %v19_v5, %v16_v6 }
  0x78   :  { %v76_v9 = vsel %vm23_vm0, 1.0, %v117_v8 }
  0x7e   :  { %v22_v7 = vpop.permute.xlu0 %21 }
  0x7f   :  { %vm24_vm1 = vcmp.eq.s32.totalorder %v22_v7, %v16_v6 }
  0x80   :  { %v77_v10 = vsel %vm24_vm1, 1.0, %v117_v8 }
  0x81   :  { %v29_v11 = vpack.c.bf16 %v77_v10, %v76_v9 }
  0x83   :  { %82 = vmatmul.msk.bf16.vlgmr.msra.gmra.mxu0 %vm38_vm2, %v29_v11 }
 0x100   :  { %v51_v12 = vpop.f32.mrf.mxu0 }
 0x101   :  { %56 = vst [vmem:[#allocation2] sm:$0xff] %v51_v12 }
 0x108   :  { %v53_v13 = vpop.f32.mrf.mxu0 }
 0x109   :  { %57 = vst [vmem:[#allocation2 + $0x8] sm:$0xff] %v53_v13 }
 0x10a   :  { %70 = dma.vmem_to_hbm [thread:$0]  %s63_s15, 256, %s65_s1, [#allocation3], %s119_s18, %s119_s18, %s120_s19  }
 0x10b   :  { %114 = dma.done.wait [#allocation3], 256  }
 0x10c   :  { %115 = vsyncadd [#allocation3], 4294967040 }
 0x10d   :  { %75 = vsyncpa [#allocation3], 1 }

</bundles_post_ra>
